<compile_context>
chip_gen: v5e
topology: v5e:2x2
jax: 0.10.0
libtpu: 0.0.40
codegen_flags: <defaults>
</compile_context>

<pallas_src>
import jax
import jax.numpy as jnp
from jax.experimental import pallas as pl
from jax.experimental.pallas import tpu as pltpu


def _pad_to(n, m):
    return ((n + m - 1) // m) * m


# ----------------------------- kernel body ---------------------------------

def _mlp_kernel(x_ref, w1_ref, b1_ref, w2_ref, b2_ref, w3_ref, b3_ref, o_ref):
    """One batch tile: three MXU matmuls fused with bias + ReLU.

    Weights arrive pre-transposed/padded/scaled; 1/sensing_range is already
    folded into w1, so there is no per-element input scaling pass here.
    Bias-add / ReLU stay in f32 (v5e has no bf16 VPU path); MXU inputs use the
    weights' dtype (bf16 by default) with f32 accumulation.
    """
    w1 = w1_ref[...]
    w2 = w2_ref[...]
    w3 = w3_ref[...]
    cdt = w1.dtype  # MXU input dtype (bf16 or f32)

    x = x_ref[...].astype(cdt)
    h1 = jnp.dot(x, w1, preferred_element_type=jnp.float32) + b1_ref[...]
    h1 = jnp.maximum(h1, 0.0)

    h2 = jnp.dot(h1.astype(cdt), w2, preferred_element_type=jnp.float32) + b2_ref[...]
    h2 = jnp.maximum(h2, 0.0)

    o = jnp.dot(h2.astype(cdt), w3, preferred_element_type=jnp.float32) + b3_ref[...]
    o_ref[...] = o.astype(o_ref.dtype)


# --------------------------- one-time weight prep ---------------------------

def prepare_params(params, sensing_range, compute_dtype=jnp.bfloat16):
    """One-time weight prep (do NOT call per forward step).

    - transpose torch-layout (out, in) weights to (in, out)
    - fold 1/sensing_range into w1 (removes the input-scaling VPU pass)
    - zero-pad all hidden/output lane dims to multiples of 128 (lane-dense vst)
    - cast weights to `compute_dtype` (bf16 by default); biases stay f32

    Note: folding 1/sensing_range before the bf16 cast rounds slightly
    differently than scaling x first; bitwise parity holds on the f32 path.
    """
    w1 = params["w1"].T.astype(jnp.float32) / sensing_range   # (2F, F)
    w2 = params["w2"].T.astype(jnp.float32)                   # (F, F//2)
    w3 = params["w3"].T.astype(jnp.float32)                   # (F//2, A)
    b1 = params["b1"].astype(jnp.float32)
    b2 = params["b2"].astype(jnp.float32)
    b3 = params["b3"].astype(jnp.float32)

    k1, f = w1.shape
    f2 = w2.shape[1]
    a = w3.shape[1]
    n1 = _pad_to(f, 128)
    n2 = _pad_to(f2, 128)
    n3 = _pad_to(a, 128)

    def pad2(w, rows, cols):
        return jnp.pad(w, ((0, rows - w.shape[0]), (0, cols - w.shape[1])))

    return {
        # contraction dim of w1 stays at 2F (full-array block dim) so x never
        # needs a per-call feature pad; hidden/out lanes are 128-aligned.
        "w1": pad2(w1, k1, n1).astype(compute_dtype),
        "b1": jnp.pad(b1, (0, n1 - f)).reshape(1, n1),
        "w2": pad2(w2, n1, n2).astype(compute_dtype),
        "b2": jnp.pad(b2, (0, n2 - f2)).reshape(1, n2),
        "w3": pad2(w3, n2, n3).astype(compute_dtype),
        "b3": jnp.pad(b3, (0, n3 - a)).reshape(1, n3),
    }


# --------------------------------- wrapper ----------------------------------

def _pick_batch_tile(B, max_tb):
    """Choose (tile_rows, padded_batch) minimizing wrapper-side padding."""
    max_tb = max(8, (max_tb // 8) * 8)
    b8 = _pad_to(B, 8)
    if b8 <= max_tb:
        # Single grid step: block == full array dims, so the (8,128) constraint
        # does not apply and x never needs a wrapper-side pad.
        return B, B
    # Multi-step grid: find a tile (multiple of 8, not too small) that divides
    # pad_to(B, 8) so padding is at most 7 rows.
    floor_tb = max(8, ((max_tb // 4) // 8) * 8)
    for cand in range(max_tb, floor_tb - 1, -8):
        if b8 % cand == 0:
            return cand, b8
    # Fallback: full-size tile, pad batch up to a tile multiple.
    return max_tb, _pad_to(B, max_tb)


def mlp_forward(x, prepped, num_actions, *, max_block_batch=1024,
                out_dtype=jnp.float32, core_parallel=False,
                xla_fallback_batch=0, trim_output=True):
    """x: (B, 2F), float32 or bfloat16 (bf16 halves the dominant HBM read).

    prepped: output of prepare_params().  Returns (B, num_actions) f32 (or
    `out_dtype`) when trim_output=True, otherwise the padded (b_pad, 128)
    lane-dense buffer for the consumer to index directly.
    """
    B, K = x.shape
    w1, b1 = prepped["w1"], prepped["b1"]
    w2, b2 = prepped["w2"], prepped["b2"]
    w3, b3 = prepped["w3"], prepped["b3"]
    n1, n2, n3 = w1.shape[1], w2.shape[1], w3.shape[1]

    if B < xla_fallback_batch:
        # Tiny-batch RL inference: the pallas_call is launch + weight-DMA
        # bound (~0.8 MB of weights vs ~KBs of x); plain fused XLA wins.
        # TODO(synk): cross-call weight prefetch (P10 semaphore-future) so the
        # weights stay VMEM-resident across single-step inference calls.
        h = jnp.maximum(x.astype(jnp.float32) @ w1.astype(jnp.float32) + b1, 0.0)
        h = jnp.maximum(h @ w2.astype(jnp.float32) + b2, 0.0)
        out = (h @ w3.astype(jnp.float32) + b3).astype(out_dtype)
        return out[:, :num_actions] if trim_output else out

    # v7x guard: 64 MiB VMEM per TC -> cap the batch tile at 1024 rows.
    try:
        vmem_cap = int(getattr(pltpu.get_tpu_info(), "vmem_capacity_bytes",
                               128 << 20))
    except Exception:  # query unavailable -> assume v5e/v6e-class VMEM
        vmem_cap = 128 << 20
    if vmem_cap <= (64 << 20):
        max_block_batch = min(max_block_batch, 1024)

    tb, b_pad = _pick_batch_tile(B, max_block_batch)
    if b_pad != B:
        # Only reached when B > max_block_batch; with the divisor search this
        # pads at most 7 rows (full-tile pad only on the fallback path).
        x = jnp.pad(x, ((0, b_pad - B), (0, 0)))

    # Size the VMEM limit from the real per-step footprint (+50% margin),
    # instead of a blanket number: weights/biases + double-buffered x/out
    # tiles + f32 intermediates.
    w_bytes = sum(int(v.size) * jnp.dtype(v.dtype).itemsize
                  for v in (w1, b1, w2, b2, w3, b3))
    x_tile = tb * K * jnp.dtype(x.dtype).itemsize
    o_tile = tb * n3 * jnp.dtype(out_dtype).itemsize
    interm = tb * (n1 + n2 + n3) * 4
    vmem_limit = int(1.5 * (2 * (x_tile + o_tile + w_bytes) + interm)) + (4 << 20)
    vmem_limit = max(16 << 20, min(vmem_limit, 64 << 20))

    # TODO(synk): pipeline_mode=pl.Buffered(1) on the resident weight specs
    # would save one redundant weight buffer on v7x once verified on-chip.
    resident = lambda arr: pl.BlockSpec(arr.shape, lambda i: (0, 0))

    # CORE_PARALLEL gives genuine dual-TC sharding on v7x; plain "parallel"
    # is harmless (and a near no-op) on single-TC v5e/v6e.
    semantics = (pltpu.CORE_PARALLEL,) if core_parallel else ("parallel",)

    out = pl.pallas_call(
        _mlp_kernel,
        out_shape=jax.ShapeDtypeStruct((b_pad, n3), out_dtype),
        grid=(b_pad // tb,),
        in_specs=[
            pl.BlockSpec((tb, K), lambda i: (i, 0)),   # x: tiled over batch
            resident(w1), resident(b1),                # weights/biases: constant
            resident(w2), resident(b2),                # block index -> VMEM-resident
            resident(w3), resident(b3),
        ],
        out_specs=pl.BlockSpec((tb, n3), lambda i: (i, 0)),  # lane-dense (128) store
        compiler_params=pltpu.CompilerParams(
            dimension_semantics=semantics,
            vmem_limit_bytes=vmem_limit,
        ),
    )(x, w1, b1, w2, b2, w3, b3)

    if trim_output:
        return out[:B, :num_actions]
    # Padded buffer: downstream should index [:B, :num_actions] directly to
    # avoid an extra slice pass over HBM.
    return out


# ------------------------- reference / demo helpers -------------------------

def xavier_uniform(key, out_features, in_features):
    bound = (6.0 / (in_features + out_features)) ** 0.5
    return jax.random.uniform(key, (out_features, in_features),
                              dtype=jnp.float32, minval=-bound, maxval=bound)


def init_params(key, num_features, num_actions):
    k1, k2, k3 = jax.random.split(key, 3)
    return {
        "w1": xavier_uniform(k1, num_features, num_features * 2),
        "b1": jnp.zeros((num_features,), jnp.float32),
        "w2": xavier_uniform(k2, num_features // 2, num_features),
        "b2": jnp.zeros((num_features // 2,), jnp.float32),
        "w3": xavier_uniform(k3, num_actions, num_features // 2),
        "b3": jnp.zeros((num_actions,), jnp.float32),
    }


def reference_forward(x, params, sensing_range):
    h = x / sensing_range
    h = jnp.maximum(h @ params["w1"].T + params["b1"], 0.0)
    h = jnp.maximum(h @ params["w2"].T + params["b2"], 0.0)
    return h @ params["w3"].T + params["b3"]


if __name__ == "__main__":
    # Small shapes consistent with the module (default F=360 scaled down).
    num_features = 32
    num_actions = 2
    sensing_range = 10.0

    key = jax.random.PRNGKey(0)
    kp, kx1, kx2 = jax.random.split(key, 3)
    params = init_params(kp, num_features, num_actions)

    # --- f32 path, batch=10: non-multiple-of-8, single full-array block -----
    batch = 10
    x = jax.random.uniform(kx1, (batch, num_features * 2), dtype=jnp.float32,
                           minval=0.0, maxval=sensing_range)
    ref = reference_forward(x, params, sensing_range)

    prepped_f32 = prepare_params(params, sensing_range, compute_dtype=jnp.float32)
    out_f32 = jax.block_until_ready(mlp_forward(x, prepped_f32, num_actions))
    assert out_f32.shape == (batch, num_actions)
    assert jnp.allclose(out_f32, ref, atol=1e-5, rtol=1e-5)

    # --- bf16 weight path (default fast MXU path), looser tolerance ---------
    prepped_bf16 = prepare_params(params, sensing_range)
    out_bf16 = jax.block_until_ready(mlp_forward(x, prepped_bf16, num_actions))
    assert out_bf16.shape == (batch, num_actions)
    assert jnp.allclose(out_bf16, ref, atol=1e-1, rtol=5e-2)

    # --- multi-tile grid path: batch=27 with a 16-row tile (tests the -------
    # --- divisor-tiling + minimal-pad + multi-step pipeline path) -----------
    batch2 = 27
    x2 = jax.random.uniform(kx2, (batch2, num_features * 2), dtype=jnp.float32,
                            minval=0.0, maxval=sensing_range)
    ref2 = reference_forward(x2, params, sensing_range)
    out2 = jax.block_until_ready(
        mlp_forward(x2, prepped_bf16, num_actions, max_block_batch=16))
    assert out2.shape == (batch2, num_actions)
    assert jnp.allclose(out2, ref2, atol=1e-1, rtol=5e-2)

    print("KERNEL_OK")
</pallas_src>

<mosaic_0001>
module attributes {stable_mosaic.version = 11 : i64} {
  func.func @_mlp_kernel(%arg0: i32, %arg1: memref<10x64xf32, #tpu.memory_space<vmem>>, %arg2: memref<64x128xf32, #tpu.memory_space<vmem>>, %arg3: memref<1x128xf32, #tpu.memory_space<vmem>>, %arg4: memref<128x128xf32, #tpu.memory_space<vmem>>, %arg5: memref<1x128xf32, #tpu.memory_space<vmem>>, %arg6: memref<128x128xf32, #tpu.memory_space<vmem>>, %arg7: memref<1x128xf32, #tpu.memory_space<vmem>>, %arg8: memref<10x128xf32, #tpu.memory_space<vmem>>) attributes {dimension_semantics = [#tpu.dimension_semantics<parallel>], iteration_bounds = array<i64: 1>, scalar_prefetch = 0 : i64, scratch_operands = 0 : i64, tpu.core_type = #tpu.core_type<tc>, window_params = [{transform_indices = @transform_0, window_bounds = array<i64: 10, 64>}, {pipeline_mode = #tpu.pipeline_mode<synchronous>, transform_indices = @transform_1, window_bounds = array<i64: 64, 128>}, {pipeline_mode = #tpu.pipeline_mode<synchronous>, transform_indices = @transform_2, window_bounds = array<i64: 1, 128>}, {pipeline_mode = #tpu.pipeline_mode<synchronous>, transform_indices = @transform_3, window_bounds = array<i64: 128, 128>}, {pipeline_mode = #tpu.pipeline_mode<synchronous>, transform_indices = @transform_4, window_bounds = array<i64: 1, 128>}, {pipeline_mode = #tpu.pipeline_mode<synchronous>, transform_indices = @transform_5, window_bounds = array<i64: 128, 128>}, {pipeline_mode = #tpu.pipeline_mode<synchronous>, transform_indices = @transform_6, window_bounds = array<i64: 1, 128>}, {transform_indices = @transform_7, window_bounds = array<i64: 10, 128>}]} {
    %c0 = arith.constant 0 : index
    %c0_0 = arith.constant 0 : index
    %0 = vector.load %arg2[%c0, %c0_0] : memref<64x128xf32, #tpu.memory_space<vmem>>, vector<64x128xf32>
    %c0_1 = arith.constant 0 : index
    %c0_2 = arith.constant 0 : index
    %1 = vector.load %arg4[%c0_1, %c0_2] : memref<128x128xf32, #tpu.memory_space<vmem>>, vector<128x128xf32>
    %c0_3 = arith.constant 0 : index
    %c0_4 = arith.constant 0 : index
    %2 = vector.load %arg6[%c0_3, %c0_4] : memref<128x128xf32, #tpu.memory_space<vmem>>, vector<128x128xf32>
    %c0_5 = arith.constant 0 : index
    %c0_6 = arith.constant 0 : index
    %3 = vector.load %arg1[%c0_5, %c0_6] : memref<10x64xf32, #tpu.memory_space<vmem>>, vector<10x64xf32>
    %cst = arith.constant dense<0.000000e+00> : vector<10x128xf32>
    %4 = tpu.matmul %3, %0, %cst {dimension_numbers = #tpu.dot_dimension_numbers<[1], [0], [0], [1], [0, 0, 1, 1], [], []>} : vector<10x64xf32>, vector<64x128xf32>, vector<10x128xf32> -> vector<10x128xf32>
    %c0_7 = arith.constant 0 : index
    %c0_8 = arith.constant 0 : index
    %5 = vector.load %arg3[%c0_7, %c0_8] : memref<1x128xf32, #tpu.memory_space<vmem>>, vector<1x128xf32>
    %6 = vector.broadcast %5 : vector<1x128xf32> to vector<10x128xf32>
    %7 = arith.addf %4, %6 : vector<10x128xf32>
    %cst_9 = arith.constant 0.000000e+00 : f32
    %8 = vector.broadcast %cst_9 : f32 to vector<10x128xf32>
    %9 = arith.maximumf %7, %8 : vector<10x128xf32>
    %cst_10 = arith.constant dense<0.000000e+00> : vector<10x128xf32>
    %10 = tpu.matmul %9, %1, %cst_10 {dimension_numbers = #tpu.dot_dimension_numbers<[1], [0], [0], [1], [0, 0, 1, 1], [], []>} : vector<10x128xf32>, vector<128x128xf32>, vector<10x128xf32> -> vector<10x128xf32>
    %c0_11 = arith.constant 0 : index
    %c0_12 = arith.constant 0 : index
    %11 = vector.load %arg5[%c0_11, %c0_12] : memref<1x128xf32, #tpu.memory_space<vmem>>, vector<1x128xf32>
    %12 = vector.broadcast %11 : vector<1x128xf32> to vector<10x128xf32>
    %13 = arith.addf %10, %12 : vector<10x128xf32>
    %cst_13 = arith.constant 0.000000e+00 : f32
    %14 = vector.broadcast %cst_13 : f32 to vector<10x128xf32>
    %15 = arith.maximumf %13, %14 : vector<10x128xf32>
    %cst_14 = arith.constant dense<0.000000e+00> : vector<10x128xf32>
    %16 = tpu.matmul %15, %2, %cst_14 {dimension_numbers = #tpu.dot_dimension_numbers<[1], [0], [0], [1], [0, 0, 1, 1], [], []>} : vector<10x128xf32>, vector<128x128xf32>, vector<10x128xf32> -> vector<10x128xf32>
    %c0_15 = arith.constant 0 : index
    %c0_16 = arith.constant 0 : index
    %17 = vector.load %arg7[%c0_15, %c0_16] : memref<1x128xf32, #tpu.memory_space<vmem>>, vector<1x128xf32>
    %18 = vector.broadcast %17 : vector<1x128xf32> to vector<10x128xf32>
    %19 = arith.addf %16, %18 : vector<10x128xf32>
    %c0_17 = arith.constant 0 : index
    %c0_18 = arith.constant 0 : index
    %20 = vector.load %arg8[%c0_17, %c0_18] : memref<10x128xf32, #tpu.memory_space<vmem>>, vector<10x128xf32>
    tpu.vector_store %arg8[%c0_17, %c0_18], %19 {strides = array<i32>} : memref<10x128xf32, #tpu.memory_space<vmem>>, vector<10x128xf32>,
    return
  }
  func.func @transform_0(%arg0: i32) -> (i32, i32) {
    %c0_i32 = arith.constant 0 : i32
    %c0_i32_0 = arith.constant 0 : i32
    return %arg0, %c0_i32 : i32, i32
  }
  func.func @transform_1(%arg0: i32) -> (i32, i32) {
    %c0_i32 = arith.constant 0 : i32
    %c0_i32_0 = arith.constant 0 : i32
    %c0_i32_1 = arith.constant 0 : i32
    return %c0_i32, %c0_i32_0 : i32, i32
  }
  func.func @transform_2(%arg0: i32) -> (i32, i32) {
    %c0_i32 = arith.constant 0 : i32
    %c0_i32_0 = arith.constant 0 : i32
    %c0_i32_1 = arith.constant 0 : i32
    return %c0_i32, %c0_i32_0 : i32, i32
  }
  func.func @transform_3(%arg0: i32) -> (i32, i32) {
    %c0_i32 = arith.constant 0 : i32
    %c0_i32_0 = arith.constant 0 : i32
    %c0_i32_1 = arith.constant 0 : i32
    return %c0_i32, %c0_i32_0 : i32, i32
  }
  func.func @transform_4(%arg0: i32) -> (i32, i32) {
    %c0_i32 = arith.constant 0 : i32
    %c0_i32_0 = arith.constant 0 : i32
    %c0_i32_1 = arith.constant 0 : i32
    return %c0_i32, %c0_i32_0 : i32, i32
  }
  func.func @transform_5(%arg0: i32) -> (i32, i32) {
    %c0_i32 = arith.constant 0 : i32
    %c0_i32_0 = arith.constant 0 : i32
    %c0_i32_1 = arith.constant 0 : i32
    return %c0_i32, %c0_i32_0 : i32, i32
  }
  func.func @transform_6(%arg0: i32) -> (i32, i32) {
    %c0_i32 = arith.constant 0 : i32
    %c0_i32_0 = arith.constant 0 : i32
    %c0_i32_1 = arith.constant 0 : i32
    return %c0_i32, %c0_i32_0 : i32, i32
  }
  func.func @transform_7(%arg0: i32) -> (i32, i32) {
    %c0_i32 = arith.constant 0 : i32
    %c0_i32_0 = arith.constant 0 : i32
    return %arg0, %c0_i32 : i32, i32
  }
}

</mosaic_0001>

<bundles_post_ra>
// kernel: tpu_custom_call.1
= control target key start
LH: loop header
LB: loop body
LE: loop exit
PB: predicated region body
PF: predicated region fallthrough
CT: control target
= control target key end

     0   :  { %12 = vsyncpa [#allocation3], 0  ;;  %s491_s0 = inlined_call_operand.hbm [shape: f32[10,64], index: 0, kind: input, shape index: {}]   ;;  %s492_s1 = inlined_call_operand.hbm [shape: f32[64,128], index: 1, kind: input, shape index: {}]   ;;  %s493_s2 = inlined_call_operand.vmem [shape: f32[1,128], index: 2, kind: input, shape index: {}]   ;;  %s494_s3 = inlined_call_operand.hbm [shape: f32[128,128], index: 3, kind: input, shape index: {}]   ;;  %s495_s4 = inlined_call_operand.vmem [shape: f32[1,128], index: 4, kind: input, shape index: {}]   ;;  %s496_s5 = inlined_call_operand.hbm [shape: f32[128,128], index: 5, kind: input, shape index: {}]   ;;  %s497_s6 = inlined_call_operand.vmem [shape: f32[1,128], index: 6, kind: input, shape index: {}]   ;;  %s498_s7 = inlined_call_operand.hbm [shape: f32[10,128], index: 7, kind: output, shape index: {}]  }
   0x1   :  { %13 = vsyncpa [#allocation6], 0 }
   0x2   :  { %14 = vsyncpa [#allocation9], 0 }
   0x3   :  { %15 = vsyncpa [#allocation4], 0  ;;  %s33_s26 = sshll.u32 %s492_s1, 4  ;;  %s403_s27 = smov [#allocation5]   ;;  %s34_s26 = int_to_ptr.hbm [resolvable:$true] %s33_s26 }
   0x4   :  { %s35_s28 = sshll.u32 %s403_s27, 4  ;;  %s20_s8 = sshll.u32 %s491_s0, 4  ;;  %s36_s28 = int_to_ptr.vmem [resolvable:$true] %s35_s28  ;;  %s21_s8 = int_to_ptr.hbm [resolvable:$true] %s20_s8 }
   0x5   :  { %s404_s9 = smov 128   ;;  %s405_s10 = smov 8  }
   0x6   :  { %41 = dma.hbm_to_vmem [thread:$0]  %s34_s26, 1024, %s36_s28, [#allocation6], %s404_s9, %s404_s9, %s405_s10  }
   0x7   :  { %s406_s11 = smov [#allocation2]   ;;  %s48_s1 = sshll.u32 %s494_s3, 4  ;;  %s49_s1 = int_to_ptr.hbm [resolvable:$true] %s48_s1 }
   0x8   :  { %s22_s12 = sshll.u32 %s406_s11, 4  ;;  %s63_s16 = sshll.u32 %s496_s5, 4  ;;  %s23_s12 = int_to_ptr.vmem [resolvable:$true] %s22_s12  ;;  %s64_s16 = int_to_ptr.hbm [resolvable:$true] %s63_s16 }
   0x9   :  { %28 = dma.hbm_to_vmem [thread:$0]  %s21_s8, 256, %s23_s12, [#allocation3], %s404_s9, %s404_s9, %s405_s10  }
   0xa   :  { %s407_s17 = smov [#allocation7]   ;;  %s408_s19 = smov [#allocation8]  }
   0xb   :  { %s50_s18 = sshll.u32 %s407_s17, 4  ;;  %s65_s3 = sshll.u32 %s408_s19, 4  ;;  %s51_s18 = int_to_ptr.vmem [resolvable:$true] %s50_s18  ;;  %s66_s3 = int_to_ptr.vmem [resolvable:$true] %s65_s3 }
   0xc   :  { %56 = dma.hbm_to_vmem [thread:$0]  %s49_s1, 2048, %s51_s18, [#allocation6], %s404_s9, %s404_s9, %s405_s10  }
   0xd   :  { %71 = dma.hbm_to_vmem [thread:$0]  %s64_s16, 2048, %s66_s3, [#allocation9], %s404_s9, %s404_s9, %s405_s10  }
   0xe   :  { %395 = dma.done.wait [#allocation3], 256  }
   0xf   :  { %396 = vsyncadd [#allocation3], 4294967040 }
  0x10   :  { %397 = dma.done.wait [#allocation6], 3072  }
  0x11   :  { %398 = vsyncadd [#allocation6], 4294964224 }
  0x12   :  { %399 = dma.done.wait [#allocation9], 2048  }
  0x13   :  { %400 = vsyncadd [#allocation9], 4294965248  ;;  %v97_v0 = vld [vmem:[#allocation5 + $0x38] sm:$0xff]  ;;  %v96_v1 = vld [vmem:[#allocation5 + $0x30] sm:$0xff]  ;;  %vm136_vm0 = vcmask 523264   ;;  %s409_s24 = smov [#allocation10]  }
  0x14   :  { %151 = vmatpush.msra.mxu0 %v97_v0  ;;  %v95_v2 = vld [vmem:[#allocation5 + $0x28] sm:$0xff]  ;;  %v113_v3 = vld [vmem:[#allocation7 + $0x78] sm:$0xff]  ;;  %v112_v4 = vld [vmem:[#allocation7 + $0x70] sm:$0xff]  ;;  %s230_s25 = sshll.u32 %s409_s24, 4  ;;  %s231_s25 = int_to_ptr.vmem [resolvable:$true] %s230_s25 }
  0x15   :  { %v94_v5 = vld [vmem:[#allocation5 + $0x20] sm:$0xff]  ;;  %172 = vmatpush.msra.mxu1 %v113_v3  ;;  %249 = vmatpush.msra.mxu3 %v113_v3  ;;  %v111_v6 = vld [vmem:[#allocation7 + $0x68] sm:$0xff]  ;;  %v93_v7 = vld [vmem:[#allocation5 + $0x18] sm:$0xff] }
  0x16   :  { %152 = vmatpush.msra.mxu0 %v96_v1  ;;  %v110_v8 = vld [vmem:[#allocation7 + $0x60] sm:$0xff]  ;;  %v92_v9 = vld [vmem:[#allocation5 + $0x10] sm:$0xff]  ;;  %v109_v10 = vld [vmem:[#allocation7 + $0x58] sm:$0xff] }
  0x17   :  { %173 = vmatpush.msra.mxu1 %v112_v4  ;;  %250 = vmatpush.msra.mxu3 %v112_v4  ;;  %v91_v11 = vld [vmem:[#allocation5 + $0x8] sm:$0xff]  ;;  %v108_v12 = vld [vmem:[#allocation7 + $0x50] sm:$0xff]  ;;  %v90_v13 = vld [vmem:[#allocation5] sm:$0xff] }
  0x18   :  { %153 = vmatpush.msra.mxu0 %v95_v2  ;;  %v130_v14 = vld [vmem:[#allocation2] sm:$0xff]  ;;  %v107_v15 = vld [vmem:[#allocation7 + $0x48] sm:$0xff]  ;;  %v106_v16 = vld [vmem:[#allocation7 + $0x40] sm:$0xff] }
  0x19   :  { %174 = vmatpush.msra.mxu1 %v111_v6  ;;  %251 = vmatpush.msra.mxu3 %v111_v6  ;;  %v105_v17 = vld [vmem:[#allocation7 + $0x38] sm:$0xff]  ;;  %v104_v18 = vld [vmem:[#allocation7 + $0x30] sm:$0xff]  ;;  %v103_v20 = vld [vmem:[#allocation7 + $0x28] sm:$0xff] }
  0x1a   :  { %154 = vmatpush.msra.mxu0 %v94_v5  ;;  %v131_v19 = vld [vmem:[#allocation2 + $0x8] sm:$0x3]  ;;  %v102_v21 = vld [vmem:[#allocation7 + $0x20] sm:$0xff]  ;;  %v100_v23 = vld [vmem:[#allocation7 + $0x10] sm:$0xff] }
  0x1b   :  { %175 = vmatpush.msra.mxu1 %v110_v8  ;;  %252 = vmatpush.msra.mxu3 %v110_v8  ;;  %v101_v22 = vld [vmem:[#allocation7 + $0x18] sm:$0xff]  ;;  %v99_v24 = vld [vmem:[#allocation7 + $0x8] sm:$0xff]  ;;  %v98_v25 = vld [vmem:[#allocation7] sm:$0xff] }
  0x1c   :  { %155 = vmatpush.msra.mxu0 %v93_v7  ;;  %v129_v26 = vld [vmem:[#allocation8 + $0x78] sm:$0xff]  ;;  %v128_v27 = vld [vmem:[#allocation8 + $0x70] sm:$0xff]  ;;  %v127_v28 = vld [vmem:[#allocation8 + $0x68] sm:$0xff] }
  0x1d   :  { %176 = vmatpush.msra.mxu1 %v109_v10  ;;  %253 = vmatpush.msra.mxu3 %v109_v10  ;;  %v126_v29 = vld [vmem:[#allocation8 + $0x60] sm:$0xff]  ;;  %v125_v30 = vld [vmem:[#allocation8 + $0x58] sm:$0xff]  ;;  %v124_v31 = vld [vmem:[#allocation8 + $0x50] sm:$0xff] }
  0x1e   :  { %156 = vmatpush.msra.mxu0 %v92_v9  ;;  %201 = vmatpush.msra.mxu2 %v129_v26  ;;  %v123_v32 = vld [vmem:[#allocation8 + $0x48] sm:$0xff]  ;;  %v122_v33 = vld [vmem:[#allocation8 + $0x40] sm:$0xff]  ;;  %v121_v34 = vld [vmem:[#allocation8 + $0x38] sm:$0xff] }
  0x1f   :  { %177 = vmatpush.msra.mxu1 %v108_v12  ;;  %254 = vmatpush.msra.mxu3 %v108_v12  ;;  %v272_v35 = vld [vmem:[%s493_s2] ss:$0 sm:$0xff]  ;;  %v119_v37 = vld [vmem:[#allocation8 + $0x28] sm:$0xff]  ;;  %v118_v40 = vld [vmem:[#allocation8 + $0x20] sm:$0xff] }
  0x20   :  { %157 = vmatpush.msra.mxu0 %v91_v11  ;;  %202 = vmatpush.msra.mxu2 %v128_v27  ;;  %v120_v36 = vld [vmem:[#allocation8 + $0x30] sm:$0xff]  ;;  %v117_v42 = vld [vmem:[#allocation8 + $0x18] sm:$0xff]  ;;  %v115_v47 = vld [vmem:[#allocation8 + $0x8] sm:$0xff] }
  0x21   :  { %178 = vmatpush.msra.mxu1 %v107_v15  ;;  %255 = vmatpush.msra.mxu3 %v107_v15  ;;  %v116_v46 = vld [vmem:[#allocation8 + $0x10] sm:$0xff]  ;;  %v114_v48 = vld [vmem:[#allocation8] sm:$0xff] }
  0x22   :  { %158 = vmatpush.msra.mxu0 %v90_v13  ;;  %203 = vmatpush.msra.mxu2 %v127_v28  ;;  %v273_v49 = vld [vmem:[%s495_s4] ss:$0 sm:$0xff]  ;;  %s232_s4 = sshll.u32 %s498_s7, 4  ;;  %s233_s4 = int_to_ptr.hbm [resolvable:$true] %s232_s4 }
  0x23   :  { %247 = vmatmul.msk.f32.vlgmr.msra.gmra.mxu0 %vm136_vm0, %v130_v14  ;;  %179 = vmatpush.msra.mxu1 %v106_v16  ;;  %v274_v56 = vld [vmem:[%s497_s6] ss:$0 sm:$0xff] }
  0x24   :  { %256 = vmatpush.msra.mxu3 %v106_v16  ;;  %204 = vmatpush.msra.mxu2 %v126_v29 }
  0x25   :  { %180 = vmatpush.msra.mxu1 %v105_v17 }
  0x26   :  { %257 = vmatpush.msra.mxu3 %v105_v17  ;;  %205 = vmatpush.msra.mxu2 %v125_v30 }
  0x27   :  { %181 = vmatpush.msra.mxu1 %v104_v18 }
  0x28   :  { %258 = vmatpush.msra.mxu3 %v104_v18  ;;  %206 = vmatpush.msra.mxu2 %v124_v31 }
  0x29   :  { %182 = vmatpush.msra.mxu1 %v103_v20 }
  0x2a   :  { %259 = vmatpush.msra.mxu3 %v103_v20  ;;  %207 = vmatpush.msra.mxu2 %v123_v32 }
  0x2b   :  { %248 = vmatmul.msk.f32.gmra.mxu0 %vm136_vm0, %v131_v19  ;;  %183 = vmatpush.msra.mxu1 %v102_v21 }
  0x2c   :  { %260 = vmatpush.msra.mxu3 %v102_v21  ;;  %208 = vmatpush.msra.mxu2 %v122_v33 }
  0x2d   :  { %184 = vmatpush.msra.mxu1 %v101_v22 }
  0x2e   :  { %261 = vmatpush.msra.mxu3 %v101_v22  ;;  %209 = vmatpush.msra.mxu2 %v121_v34 }
  0x2f   :  { %185 = vmatpush.msra.mxu1 %v100_v23 }
  0x30   :  { %262 = vmatpush.msra.mxu3 %v100_v23  ;;  %210 = vmatpush.msra.mxu2 %v120_v36 }
  0x31   :  { %186 = vmatpush.msra.mxu1 %v99_v24 }
  0x32   :  { %263 = vmatpush.msra.mxu3 %v99_v24  ;;  %211 = vmatpush.msra.mxu2 %v119_v37 }
  0x33   :  { %187 = vmatpush.msra.mxu1 %v98_v25 }
  0x34   :  { %264 = vmatpush.msra.mxu3 %v98_v25  ;;  %212 = vmatpush.msra.mxu2 %v118_v40 }
  0x36   :  { %213 = vmatpush.msra.mxu2 %v117_v42 }
  0x38   :  { %214 = vmatpush.msra.mxu2 %v116_v46 }
  0x3a   :  { %215 = vmatpush.msra.mxu2 %v115_v47 }
  0x3c   :  { %216 = vmatpush.msra.mxu2 %v114_v48 }
  0xa0   :  { %v160_v38 = vpop.f32.mrf.mxu0 }
  0xa1   :  { %v161_v39 = vadd.f32 %v272_v35, %v160_v38 }
  0xa3   :  { %v166_v41 = vmax.f32 %v161_v39, 0.0 }
  0xa5   :  { %188 = vmatmul.f32.vlgmr.msra.gmra.mxu1 %v166_v41 }
  0xa8   :  { %v163_v43 = vpop.f32.mrf.mxu0 }
  0xa9   :  { %v164_v44 = vadd.f32 %v272_v35, %v163_v43 }
  0xab   :  { %v167_v45 = vmax.f32 %v164_v44, 0.0 }
  0xad   :  { %191 = vmatmul.f32.vlgmr.msra.gmra.mxu3 %v167_v45 }
 0x122   :  { %v189_v50 = vpop.f32.mrf.mxu1 }
 0x123   :  { %v190_v51 = vadd.f32 %v273_v49, %v189_v50 }
 0x125   :  { %v195_v52 = vmax.f32 %v190_v51, 0.0 }
 0x127   :  { %217 = vmatmul.f32.vlgmr.msra.gmra.mxu2 %v195_v52 }
 0x130   :  { %v192_v53 = vpop.f32.mrf.mxu3 }
 0x131   :  { %v193_v54 = vadd.f32 %v273_v49, %v192_v53 }
 0x133   :  { %v196_v55 = vmax.f32 %v193_v54, 0.0 }
 0x135   :  { %220 = vmatmul.f32.gmra.mxu2 %v196_v55 }
 0x1aa   :  { %v218_v57 = vpop.f32.mrf.mxu2 }
 0x1ab   :  { %v219_v58 = vadd.f32 %v274_v56, %v218_v57 }
 0x1ad   :  { %224 = vst [vmem:[#allocation10] sm:$0xff] %v219_v58 }
 0x1b8   :  { %v221_v59 = vpop.f32.mrf.mxu2 }
 0x1b9   :  { %v222_v60 = vadd.f32 %v274_v56, %v221_v59 }
 0x1bb   :  { %225 = vst [vmem:[#allocation10 + $0x8] sm:$0x3] %v222_v60 }
 0x1bc   :  { %238 = dma.vmem_to_hbm [thread:$0]  %s231_s25, 256, %s233_s4, [#allocation4], %s404_s9, %s404_s9, %s405_s10  }
 0x1bd   :  { %401 = dma.done.wait [#allocation4], 256  }
 0x1be   :  { %402 = vsyncadd [#allocation4], 4294967040 }
 0x1bf   :  { %243 = vsyncpa [#allocation3], 1 }
 0x1c0   :  { %244 = vsyncpa [#allocation6], 1 }
 0x1c1   :  { %245 = vsyncpa [#allocation9], 1 }
 0x1c2   :  { %246 = vsyncpa [#allocation4], 1 }

</bundles_post_ra>
